<compile_context>
chip_gen: v7x
topology: tpu7x:2x2x1
jax: 0.10.0
libtpu: 0.0.40
codegen_flags: <defaults>
</compile_context>

<pallas_src>
import math

import jax
import jax.numpy as jnp
from jax.experimental import pallas as pl
from jax.experimental.pallas import tpu as pltpu


def _round_up(x: int, m: int) -> int:
    return ((x + m - 1) // m) * m


def _compute_fold(F_dim: int) -> int:
    """Rows folded per kernel row so the output lane width is a multiple of 128."""
    g = math.gcd(F_dim, 128)
    fold = 128 // g                  # L = fold * F_dim = lcm(F_dim, 128)
    if fold * F_dim > 1024:          # pathological F_dim (huge lcm with 128)
        # TODO(synk): lane-sparse fallback -> masked stores; correct but slow.
        fold = 1
    return fold


def prepare_fourier_weight(wr_weight):
    """Per-weight precompute (hoisted out of the per-call path).

    Returns (fold, F_dim, w_bd) where w_bd is the repeat-interleaved,
    block-diagonal weight of shape (fold*M, fold*F_dim).
    """
    F_half, M = wr_weight.shape
    F_dim = 2 * F_half
    fold = _compute_fold(F_dim)
    # repeat_interleave(2, dim=-1) commutes with elementwise cos/sin, so bake it
    # into the weight columns: one matmul, no in-kernel lane interleave.
    w_full = jnp.repeat(wr_weight.T.astype(jnp.float32), 2, axis=1)      # (M, F_dim)
    eye = jnp.eye(fold, dtype=jnp.float32)
    w_bd = jnp.einsum("pq,mf->pmqf", eye, w_full).reshape(fold * M, fold * F_dim)
    return fold, F_dim, w_bd


def fourier_pe_kernel(x_ref, w_ref, out_ref):
    # x_ref:   (TM, K)     K = fold*M      folded coordinate rows
    # w_ref:   (K,  L)     L = fold*F_dim  block-diagonal repeat-interleaved weight
    # out_ref: (2, TM, L)  out[0]=cos, out[1]=sin (fused stack -> single HBM write)
    proj = jnp.dot(x_ref[...], w_ref[...], preferred_element_type=jnp.float32)
    # TODO(synk): if a v7x bundle dump shows EUP-bound, fold by 128//F_half,
    # evaluate cos/sin once per unique lane and x2-interleave via XLU pre-store.
    out_ref[0] = jnp.cos(proj)
    out_ref[1] = jnp.sin(proj)


def learnable_fourier_pe(x, wr_weight=None, *, prepared=None, tile_rows=2048):
    """x: (B, N, M) float32; wr_weight: (F_dim//2, M) float32 (torch Linear layout).

    Returns (2, B, 1, N, F_dim) float32, matching the PyTorch module.
    """
    if prepared is None:
        prepared = prepare_fourier_weight(wr_weight)
    fold, F_dim, w_bd = prepared

    B, N, M = x.shape
    BN = B * N
    K = fold * M
    L = fold * F_dim

    # --- fold rows: pad BN only up to a multiple of `fold` (< fold wasted rows;
    # no rounding up to the tile size -> no large garbage writeback). ----------
    BN_fold = _round_up(BN, fold)
    R = BN_fold // fold                                    # folded kernel rows

    x2 = x.reshape(BN, M).astype(jnp.float32)
    if BN_fold != BN:
        x2 = jnp.pad(x2, ((0, BN_fold - BN), (0, 0)))      # zeros -> cos=1/sin=0
    xf = x2.reshape(R, K)

    # --- row tile: big enough to amortize the ~0.35us grid-step overhead, and
    # capped so the grid has >= 2 "parallel" steps (keeps both v7x TCs busy).
    # Per-step VMEM (double-buffered out block 2*TM*L*4 x2) stays well under the
    # default scoped VMEM on v5e/v6e/v7x, so no vmem_limit override is needed.
    TM = min(int(tile_rows), _round_up(pl.cdiv(R, 2), 8))
    TM = max(TM, 8)
    grid = (pl.cdiv(R, TM),)        # ragged last block handled by Pallas

    out = pl.pallas_call(
        fourier_pe_kernel,
        out_shape=jax.ShapeDtypeStruct((2, R, L), jnp.float32),
        grid=grid,
        in_specs=[
            pl.BlockSpec((TM, K), lambda i: (i, 0)),
            pl.BlockSpec((K, L), lambda i: (0, 0)),
        ],
        out_specs=pl.BlockSpec((2, TM, L), lambda i: (0, i, 0)),
        compiler_params=pltpu.CompilerParams(
            dimension_semantics=("parallel",),
        ),
    )(xf, w_bd)

    # Row-major (2, R, L) is bit-identical to (2, R*fold, F_dim).
    out = out.reshape(2, BN_fold, F_dim)
    if BN_fold != BN:
        # Rare (only when BN % fold != 0): materializing slice, but padding is
        # < fold rows so the common aligned path never pays it.
        out = out[:, :BN, :]
    return out.reshape(2, B, N, F_dim)[:, :, None, :, :]   # unsqueeze(-3) -> head dim 1


def _reference(x, wr_weight):
    """Pure-JAX transcription of the PyTorch forward (for verification)."""
    projected = jnp.einsum("bnm,fm->bnf", x, wr_weight)
    cosines, sines = jnp.cos(projected), jnp.sin(projected)
    emb = jnp.stack([cosines, sines], axis=0)[:, :, None, :, :]    # (2,B,1,N,F/2)
    return jnp.repeat(emb, 2, axis=-1)                             # (2,B,1,N,F)


if __name__ == "__main__":
    # Module hyper-params: M = coord dim (2), dim = F_dim = 32, gamma = 1.0
    M, dim, gamma = 2, 32, 1.0
    F_dim = dim
    B, N = 2, 8

    key = jax.random.PRNGKey(0)
    k_w, k_x = jax.random.split(key)

    # nn.init.normal_(Wr.weight, mean=0, std=gamma**-2); Wr.weight: (F_dim//2, M)
    wr_weight = (gamma ** -2) * jax.random.normal(
        k_w, (F_dim // 2, M), dtype=jnp.float32
    )
    # Weight glue precomputed once, reused across calls (hoisted out of forward).
    prepared = jax.tree_util.tree_map(jax.block_until_ready,
                                      prepare_fourier_weight(wr_weight))

    x = jax.random.uniform(k_x, (B, N, M), dtype=jnp.float32, minval=-1.0, maxval=1.0)
    out = jax.block_until_ready(learnable_fourier_pe(x, prepared=prepared))
    ref = _reference(x, wr_weight)
    assert out.shape == (2, B, 1, N, F_dim), out.shape
    assert jnp.allclose(out, ref, atol=1e-5, rtol=1e-5)

    # Larger input: 2-step parallel grid, ragged last block, fold-aligned (no slice).
    B2, N2 = 2, 2500
    x_big = jax.random.uniform(
        jax.random.PRNGKey(1), (B2, N2, M), dtype=jnp.float32, minval=-1.0, maxval=1.0
    )
    out_big = jax.block_until_ready(learnable_fourier_pe(x_big, prepared=prepared))
    ref_big = _reference(x_big, wr_weight)
    assert out_big.shape == (2, B2, 1, N2, F_dim), out_big.shape
    assert jnp.allclose(out_big, ref_big, atol=1e-5, rtol=1e-5)

    # Non-fold-aligned row count: exercises the tiny-padding + slice path.
    B3, N3 = 2, 2501
    x_odd = jax.random.uniform(
        jax.random.PRNGKey(2), (B3, N3, M), dtype=jnp.float32, minval=-1.0, maxval=1.0
    )
    out_odd = jax.block_until_ready(learnable_fourier_pe(x_odd, prepared=prepared))
    ref_odd = _reference(x_odd, wr_weight)
    assert out_odd.shape == (2, B3, 1, N3, F_dim), out_odd.shape
    assert jnp.allclose(out_odd, ref_odd, atol=1e-5, rtol=1e-5)

    print("KERNEL_OK")
</pallas_src>

<mosaic_0001>
module attributes {stable_mosaic.version = 11 : i64} {
  func.func @fourier_pe_kernel(%arg0: i32, %arg1: memref<8x8xf32, #tpu.memory_space<vmem>>, %arg2: memref<8x128xf32, #tpu.memory_space<vmem>>, %arg3: memref<2x8x128xf32, #tpu.memory_space<vmem>>) attributes {dimension_semantics = [#tpu.dimension_semantics<parallel>], iteration_bounds = array<i64: 1>, scalar_prefetch = 0 : i64, scratch_operands = 0 : i64, tpu.core_type = #tpu.core_type<tc>, window_params = [{transform_indices = @transform_0, window_bounds = array<i64: 8, 8>}, {pipeline_mode = #tpu.pipeline_mode<synchronous>, transform_indices = @transform_1, window_bounds = array<i64: 8, 128>}, {transform_indices = @transform_2, window_bounds = array<i64: 2, 8, 128>}]} {
    %c0 = arith.constant 0 : index
    %c0_0 = arith.constant 0 : index
    %0 = vector.load %arg1[%c0, %c0_0] : memref<8x8xf32, #tpu.memory_space<vmem>>, vector<8x8xf32>
    %c0_1 = arith.constant 0 : index
    %c0_2 = arith.constant 0 : index
    %1 = vector.load %arg2[%c0_1, %c0_2] : memref<8x128xf32, #tpu.memory_space<vmem>>, vector<8x128xf32>
    %cst = arith.constant dense<0.000000e+00> : vector<8x128xf32>
    %2 = tpu.matmul %0, %1, %cst {dimension_numbers = #tpu.dot_dimension_numbers<[1], [0], [0], [1], [0, 0, 1, 1], [], []>} : vector<8x8xf32>, vector<8x128xf32>, vector<8x128xf32> -> vector<8x128xf32>
    %3 = math.cos %2 : vector<8x128xf32>
    %c0_3 = arith.constant 0 : index
    %c0_4 = arith.constant 0 : index
    %c0_5 = arith.constant 0 : index
    %4 = vector.load %arg3[%c0_3, %c0_4, %c0_5] : memref<2x8x128xf32, #tpu.memory_space<vmem>>, vector<1x8x128xf32>
    %5 = vector.shape_cast %4 : vector<1x8x128xf32> to vector<8x128xf32>
    %6 = vector.shape_cast %3 : vector<8x128xf32> to vector<1x8x128xf32>
    tpu.vector_store %arg3[%c0_3, %c0_4, %c0_5], %6 {strides = array<i32>} : memref<2x8x128xf32, #tpu.memory_space<vmem>>, vector<1x8x128xf32>,
    %7 = math.sin %2 : vector<8x128xf32>
    %c1 = arith.constant 1 : index
    %c0_6 = arith.constant 0 : index
    %c0_7 = arith.constant 0 : index
    %8 = vector.load %arg3[%c1, %c0_6, %c0_7] : memref<2x8x128xf32, #tpu.memory_space<vmem>>, vector<1x8x128xf32>
    %9 = vector.shape_cast %8 : vector<1x8x128xf32> to vector<8x128xf32>
    %10 = vector.shape_cast %7 : vector<8x128xf32> to vector<1x8x128xf32>
    tpu.vector_store %arg3[%c1, %c0_6, %c0_7], %10 {strides = array<i32>} : memref<2x8x128xf32, #tpu.memory_space<vmem>>, vector<1x8x128xf32>,
    return
  }
  func.func @transform_0(%arg0: i32) -> (i32, i32) {
    %c0_i32 = arith.constant 0 : i32
    %c0_i32_0 = arith.constant 0 : i32
    return %arg0, %c0_i32 : i32, i32
  }
  func.func @transform_1(%arg0: i32) -> (i32, i32) {
    %c0_i32 = arith.constant 0 : i32
    %c0_i32_0 = arith.constant 0 : i32
    %c0_i32_1 = arith.constant 0 : i32
    return %c0_i32, %c0_i32_0 : i32, i32
  }
  func.func @transform_2(%arg0: i32) -> (i32, i32, i32) {
    %c0_i32 = arith.constant 0 : i32
    %c0_i32_0 = arith.constant 0 : i32
    %c0_i32_1 = arith.constant 0 : i32
    return %c0_i32, %arg0, %c0_i32_0 : i32, i32, i32
  }
}

</mosaic_0001>

<bundles_post_ra>
// kernel: tpu_custom_call.1
= control target key start
LH: loop header
LB: loop body
LE: loop exit
PB: predicated region body
PF: predicated region fallthrough
CT: control target
= control target key end

     0   :  { %7 = vsyncpa [#allocation3], 0  ;;  %s548_s0 = inlined_call_operand.hbm [shape: f32[4,8], index: 0, kind: input, shape index: {}]   ;;  %s549_s1 = inlined_call_operand.hbm [shape: f32[8,128], index: 1, kind: input, shape index: {}]   ;;  %s550_s2 = inlined_call_operand.hbm [shape: f32[2,4,128], index: 2, kind: output, shape index: {}]  }
   0x1   :  { %8 = vsyncpa [#allocation6], 0 }
   0x2   :  { %9 = vsyncpa [#allocation4], 0 }
   0x3   :  { %14 = vsyncadd [#allocation3], 64  ;;  %s465_s9 = smov [#allocation2]   ;;  %s415_s13 = scalar_lea.hbm %s548_s0, 64 }
   0x4   :  { %s15_s10 = sshll.u32 %s465_s9, 4  ;;  %p416_p0 = scmp.ne.s32.totalorder %s548_s0, %s415_s13  ;;  %s16_s10 = int_to_ptr.vmem [resolvable:$true] %s15_s10 }
   0x5   :  { %p419_p1 = scmp.lt.u32.totalorder %s415_s13, %s548_s0 }
   0x7   :  { %p421_p2 = pnand %p419_p1, %p416_p0 }
   0x9   :  { %424 = shalt.err (!%p421_p2)
}
   0xa   :  { %s425_s18 = scalar_lea.vmem %s16_s10, 64  ;;  %s429_s19 = scalar_lea.vmem %s16_s10, 128 }
   0xb   :  { %p426_p3 = scmp.ne.s32.totalorder %s16_s10, %s425_s18  ;;  %p430_p4 = scmp.lt.s32.totalorder %s16_s10, %s16_s10 }
   0xc   :  { %p431_p5 = scmp.lt.s32.totalorder %s429_s19, %s425_s18 }
   0xe   :  { %p432_p6 = por %p431_p5, %p430_p4 }
  0x10   :  { %p433_p7 = pnand %p432_p6, %p426_p3 }
  0x12   :  { %436 = shalt.err (!%p433_p7)
}
  0x13   :  { %s466_s20 = smov 64   ;;  %s467_s21 = smov 4  }
  0x14   :  { %21 = dma.hbm_to_vmem [thread:$0]  %s548_s0, 64, %s16_s10, [#allocation3], %s466_s20, %s466_s20, %s467_s21  }
  0x15   :  { %s468_s24 = smov [#allocation5]   ;;  %s437_s28 = scalar_lea.hbm %s549_s1, 128 }
  0x16   :  { %s28_s25 = sshll.u32 %s468_s24, 4  ;;  %p438_p8 = scmp.ne.s32.totalorder %s549_s1, %s437_s28  ;;  %s29_s25 = int_to_ptr.vmem [resolvable:$true] %s28_s25 }
  0x17   :  { %p441_p9 = scmp.lt.u32.totalorder %s437_s28, %s549_s1 }
  0x19   :  { %p443_p10 = pnand %p441_p9, %p438_p8 }
  0x1b   :  { %446 = shalt.err (!%p443_p10)
}
  0x1c   :  { %s447_s5 = scalar_lea.vmem %s29_s25, 128  ;;  %p452_p12 = scmp.lt.s32.totalorder %s29_s25, %s29_s25 }
  0x1d   :  { %p448_p11 = scmp.ne.s32.totalorder %s29_s25, %s447_s5  ;;  %p453_p13 = scmp.lt.s32.totalorder %s447_s5, %s447_s5 }
  0x1f   :  { %p454_p0 = por %p453_p13, %p452_p12 }
  0x21   :  { %p455_p1 = pnand %p454_p0, %p448_p11 }
  0x23   :  { %458 = shalt.err (!%p455_p1)
}
  0x24   :  { %31 = dma.hbm_to_vmem [thread:$0]  %s549_s1, 128, %s29_s25, [#allocation6]  }
  0x25   :  { %459 = dma.done.wait [#allocation3], 128  }
  0x26   :  { %460 = vsyncadd [#allocation3], 4294967168 }
  0x27   :  { %461 = dma.done.wait [#allocation6], 128  }
  0x28   :  { %462 = vsyncadd [#allocation6], 4294967168  ;;  %v469_v0 = vmov 0.0   ;;  %vm470_vm0 = vmmov 0   ;;  %vm40_vm1 = vcmask 64512   ;;  %v39_v1 = vld [vmem:[#allocation5] sm:$0xff] }
  0x29   :  { %382 = vmatprep.subr.mxu0 %v469_v0  ;;  %384 = vmatprep.mubr.msk.f32.mxu0 %vm470_vm0, %v469_v0  ;;  %v38_v2 = vld [vmem:[#allocation2] sm:$0xff]  ;;  %v471_v15 = vmov 683565275   ;;  %v472_v17 = vmov 2475754826  }
  0x2a   :  { %383 = vmatpush3.msra.mxu0 %v39_v1  ;;  %v473_v20 = vmov 2131351028   ;;  %v474_v23 = vmov 2102212464   ;;  %v475_v26 = vmov 920167782  }
  0x2b   :  { %385 = vmatmul.mubr.msk.f32.vlgmr.msra.gmra.mrb[0].mxu0 %vm40_vm1, %v38_v2  ;;  %v476_v29 = vmov 1326507024  }
  0xfe   :  { %v524_v3 = vpop.f32.mrb[0].mxu0 }
  0xff   :  { %v117_v4 = vand.u32 2139095040, %v524_v3  ;;  %v386_v5 = vpop.f32.mrb[1].mxu0  ;;  %v114_v9 = vand.u32 2147483647, %v524_v3  ;;  %vm116_vm9 = vcmp.lt.s32.totalorder %v524_v3, 0  ;;  %vm206_vm1 = vweird.f32 %v524_v3 }
 0x101   :  { %v118_v6 = vshrl.u32 %v117_v4, 23  ;;  %v121_v12 = vand.u32 8388607, %v114_v9  ;;  %vm115_vm10 = vcmp.le.f32.partialorder %v114_v9, 0.7853982 }
 0x103   :  { %v372_v7 = vadd.s32 4294967169, %v118_v6  ;;  %v122_v31 = vor.u32 8388608, %v121_v12 }
 0x105   :  { %v124_v8 = vadd.s32 1, %v372_v7  ;;  %v162_v45 = vshll.u32 %v122_v31, 8 }
 0x107   :  { %vm125_vm2 = vcmp.gt.s32.totalorder %v124_v8, 0 }
 0x108   :  { %v126_v10 = vsel %vm125_vm2, %v124_v8, 0 }
 0x109   :  { %v128_v11 = vand.u32 31, %v126_v10  ;;  %v127_v14 = vshrl.u32 %v126_v10, 5 }
 0x10b   :  { %v129_v13 = vsub.s32 32, %v128_v11  ;;  %v131_v16 = vshll.u32 %v471_v15, %v128_v11  ;;  %v134_v18 = vshll.u32 %v472_v17, %v128_v11  ;;  %v137_v22 = vshll.u32 %v473_v20, %v128_v11 }
 0x10c   :  { %v140_v25 = vshll.u32 %v474_v23, %v128_v11  ;;  %v143_v28 = vshll.u32 %v475_v26, %v128_v11  ;;  %vm146_vm3 = vcmp.lt.s32.totalorder %v127_v14, 1  ;;  %vm149_vm4 = vcmp.lt.s32.totalorder %v127_v14, 4 }
 0x10d   :  { %v132_v19 = vshrl.u32 %v472_v17, %v129_v13  ;;  %v135_v21 = vshrl.u32 %v473_v20, %v129_v13  ;;  %v138_v24 = vshrl.u32 %v474_v23, %v129_v13  ;;  %v141_v27 = vshrl.u32 %v475_v26, %v129_v13 }
 0x10e   :  { %v144_v30 = vshrl.u32 %v476_v29, %v129_v13  ;;  %v130_v40 = vshrl.u32 %v471_v15, %v129_v13  ;;  %vm148_vm5 = vcmp.lt.s32.totalorder %v127_v14, 3  ;;  %vm147_vm6 = vcmp.lt.s32.totalorder %v127_v14, 2 }
 0x10f   :  { %v133_v32 = vor.u32 %v132_v19, %v131_v16  ;;  %v136_v33 = vor.u32 %v135_v21, %v134_v18  ;;  %v139_v34 = vor.u32 %v138_v24, %v137_v22  ;;  %v142_v35 = vor.u32 %v141_v27, %v140_v25 }
 0x110   :  { %v145_v36 = vor.u32 %v144_v30, %v143_v28 }
 0x111   :  { %v151_v37 = vsel %vm149_vm4, %v139_v34, 2102212464  ;;  %v154_v38 = vsel %vm146_vm3, %v133_v32, %v136_v33  ;;  %v158_v39 = vsel %vm146_vm3, %v136_v33, %v139_v34  ;;  %v155_v41 = vsel %vm149_vm4, %v142_v35, 920167782 }
 0x112   :  { %v159_v42 = vsel %vm149_vm4, %v145_v36, 1326507024  ;;  %v156_v43 = vsel %vm148_vm5, %v139_v34, %v155_v41  ;;  %v150_v46 = vsel %vm146_vm3, %v130_v40, %v133_v32  ;;  %v152_v47 = vsel %vm148_vm5, %v136_v33, %v151_v37 }
 0x113   :  { %v160_v44 = vsel %vm148_vm5, %v142_v35, %v159_v42  ;;  %v157_v48 = vsel %vm147_vm6, %v154_v38, %v156_v43  ;;  %v153_v54 = vsel %vm147_vm6, %v150_v46, %v152_v47 }
 0x114   :  { %v161_v49 = vsel %vm147_vm6, %v158_v39, %v160_v44  ;;  %v533_v52 = vmul.u32.u64.low %v162_v45, %v157_v48  ;;  %v534_v53 = vmul.u32.u64.high %v162_v45, %v157_v48, %v533_v52  ;;  %v169_v56 = vmul.u32 %v162_v45, %v153_v54 }
 0x115   :  { %v530_v50 = vmul.u32.u64.low %v162_v45, %v161_v49  ;;  %v531_v51 = vmul.u32.u64.high %v162_v45, %v161_v49, %v530_v50 }
 0x116   :  { %v172_v55 = vadd.s32 1, %v534_v53 }
 0x117   :  { %vm171_vm7 = vc.u32 %v531_v51, %v533_v52  ;;  %v170_v5 = vadd.s32 %v533_v52, %v531_v51 }
 0x118   :  { %v173_v57 = vsel %vm171_vm7, %v172_v55, %v534_v53 }
 0x119   :  { %v174_v58 = vadd.s32 %v173_v57, %v169_v56 }
 0x11b   :  { %v175_v59 = vadd.s32 536870912, %v174_v58 }
 0x11d   :  { %v176_v60 = vshrl.u32 %v175_v59, 30 }
 0x11f   :  { %v177_v61 = vshll.u32 %v176_v60, 30  ;;  %v200_v18 = vsub.s32 4, %v176_v60 }
 0x121   :  { %v178_v62 = vsub.s32 %v174_v58, %v177_v61  ;;  %v201_v21 = vsel %vm116_vm9, %v200_v18, %v176_v60 }
 0x122   :  { %v203_v23 = vsel %vm115_vm10, 0, %v201_v21 }
 0x123   :  { %v180_v63 = vsub.s32 0, %v178_v62  ;;  %v311_v24 = vadd.s32 3, %v203_v23  ;;  %v207_v25 = vand.u32 3, %v203_v23 }
 0x125   :  { %v373_v0 = vmin.u32 %v180_v63, %v178_v62  ;;  %v312_v26 = vand.u32 3, %v311_v24  ;;  %vm212_vm11 = vcmp.eq.s32.totalorder %v207_v25, 2  ;;  %vm209_vm13 = vcmp.eq.s32.totalorder %v207_v25, 0 }
 0x126   :  { %vm208_vm15 = vcmp.lt.s32.totalorder %v207_v25, 2 }
 0x127   :  { %v182_v1 = vclz %v373_v0  ;;  %vm317_vm12 = vcmp.eq.s32.totalorder %v312_v26, 2  ;;  %vm314_vm14 = vcmp.eq.s32.totalorder %v312_v26, 0  ;;  %vm313_vm0 = vcmp.lt.s32.totalorder %v312_v26, 2 }
 0x129   :  { %v374_v2 = vadd.s32 4294967294, %v182_v1 }
 0x12b   :  { %vm375_vm8 = vcmp.lt.s32.totalorder %v374_v2, 0 }
 0x12c   :  { %v185_v4 = vsel %vm375_vm8, 0, %v374_v2 }
 0x12d   :  { %v186_v6 = vsub.s32 32, %v185_v4  ;;  %v190_v7 = vsub.s32 4294967266, %v185_v4  ;;  %v187_v8 = vshll.u32 %v178_v62, %v185_v4 }
 0x12f   :  { %v188_v10 = vshrl.u32 %v170_v5, %v186_v6  ;;  %v191_v11 = vadd.s32 127, %v190_v7 }
 0x131   :  { %v189_v12 = vor.u32 %v188_v10, %v187_v8  ;;  %v192_v13 = vshll.u32 %v191_v11, 23 }
 0x133   :  { %v193_v14 = vor.u32 4788187, %v192_v13  ;;  %v196_v16 = vcvt.s32.f32 %v189_v12 }
 0x135   :  { %v194_v15 = vand.u32 2147483647, %v193_v14 }
 0x137   :  { %v197_v17 = vmul.f32 %v196_v16, %v194_v15 }
 0x139   :  { %v198_v19 = vxor.u32 2147483648, %v197_v17 }
 0x13b   :  { %v199_v20 = vsel %vm116_vm9, %v198_v19, %v197_v17 }
 0x13c   :  { %v202_v22 = vsel %vm115_vm10, %v524_v3, %v199_v20 }
 0x13d   :  { %411 = vcosq.f32 %v202_v22 }
 0x13e   :  { %413 = vsinq.f32 %v202_v22 }
 0x147   :  { %v412_v27 = vpop.eup %411 }
 0x148   :  { %v414_v28 = vpop.eup %413  ;;  %v213_v29 = vxor.u32 2147483648, %v412_v27 }
 0x149   :  { %v210_v30 = vxor.u32 2147483648, %v414_v28 }
 0x14a   :  { %v214_v31 = vsel %vm212_vm11, %v213_v29, %v414_v28  ;;  %v319_v9 = vsel %vm317_vm12, %v213_v29, %v414_v28 }
 0x14b   :  { %v211_v32 = vsel %vm209_vm13, %v412_v27, %v210_v30  ;;  %v316_v33 = vsel %vm314_vm14, %v412_v27, %v210_v30 }
 0x14c   :  { %v215_v34 = vsel %vm208_vm15, %v211_v32, %v214_v31  ;;  %v320_v35 = vsel %vm313_vm0, %v316_v33, %v319_v9 }
 0x14d   :  { %v216_v36 = vsel %vm206_vm1, nan, %v215_v34  ;;  %v321_v37 = vsel %vm206_vm1, nan, %v320_v35 }
 0x14e   :  { %217 = vst [vmem:[#allocation7] sm:$0xff] %v216_v36  ;;  %323 = vst [vmem:[#allocation7 + $0x8] sm:$0xff] %v321_v37 }
 0x14f   :  { %328 = vsyncadd [#allocation4], 128  ;;  %s477_s1 = smov [#allocation7]   ;;  %s478_s8 = smov 128  }
 0x150   :  { %s345_s7 = sshll.u32 %s477_s1, 4  ;;  %352 = sst [smem:[#allocation9]] %s478_s8  ;;  %s346_s7 = int_to_ptr.vmem [resolvable:$true] %s345_s7 }
 0x151   :  { %s479_s9 = smov 64   ;;  %s480_s10 = smov 1  }
 0x152   :  { %354 = sst [smem:[#allocation9 + $0x1]] %s479_s9  ;;  %s481_s11 = smov 4  }
 0x153   :  { %356 = sst [smem:[#allocation9 + $0x2]] %s480_s10  ;;  %s482_s12 = smov [#allocation4]  }
 0x154   :  { %358 = sst [smem:[#allocation9 + $0x3]] %s479_s9  ;;  %s483_s13 = smov [#allocation8]  }
 0x155   :  { %360 = sst [smem:[#allocation9 + $0x4]] %s479_s9  ;;  %s484_s14 = smov 0  }
 0x156   :  { %362 = sst [smem:[#allocation9 + $0x5]] %s481_s11 }
 0x157   :  { %364 = dma.general %s346_s7, 128, %s550_s2, %s482_s12, %s483_s13, [#allocation9], %s484_s14, 0  }
 0x158   :  { %463 = dma.done.wait [#allocation4], 256  }
 0x159   :  { %464 = vsyncadd [#allocation4], 4294967040 }
 0x15a   :  { %368 = vsyncpa [#allocation3], 1 }
 0x15b   :  { %369 = vsyncpa [#allocation6], 1 }
 0x15c   :  { %370 = vsyncpa [#allocation4], 1 }

</bundles_post_ra>
